<compile_context>
chip_gen: v5e
topology: v5e:2x2
jax: 0.10.0
libtpu: 0.0.40
codegen_flags: <defaults>
</compile_context>

<pallas_src>
import functools

import jax
import jax.numpy as jnp
from jax.experimental import pallas as pl
from jax.experimental.pallas import tpu as pltpu


def _round_up(x, n):
    return (x + n - 1) // n * n


def _cdiv(a, b):
    return -(-a // b)


def _vmem_capacity_bytes():
    try:
        return int(pltpu.get_tpu_info().vmem_capacity_bytes)
    except Exception:
        return 64 * 2**20  # conservative (v7x per-TC VMEM); safe everywhere


def _prep2d(a, rows_p, cols_p, dtype):
    """Cast + zero-pad to (rows_p, cols_p); both steps skipped when no-ops."""
    if a.dtype != dtype:
        a = a.astype(dtype)
    r, c = a.shape
    if (r, c) != (rows_p, cols_p):
        a = jnp.pad(a, ((0, rows_p - r), (0, cols_p - c)))
    return a


# --------------------------------------------------------------------------
# Kernels
# --------------------------------------------------------------------------
def _ffn_kernel_resident(x_ref, w1_ref, b1_ref, w2_ref, b2_ref, o_ref):
    # Full W1/W2 resident in VMEM; one grid axis over M tiles.
    h = jnp.dot(x_ref[...], w1_ref[...], preferred_element_type=jnp.float32)
    h = jnp.maximum(h + b1_ref[...], 0.0)                 # bias/relu in f32
    out = jnp.dot(h.astype(w2_ref.dtype), w2_ref[...],
                  preferred_element_type=jnp.float32)
    o_ref[...] = (out + b2_ref[...]).astype(o_ref.dtype)


def _ffn_kernel_ktiled(x_ref, w1_ref, b1_ref, w2_ref, b2_ref, o_ref, acc_ref):
    # grid = (M_tiles, FF_tiles); reduction over the d_ff axis (last, arbitrary).
    k = pl.program_id(1)

    @pl.when(k == 0)
    def _init():
        acc_ref[...] = jnp.zeros_like(acc_ref)

    h = jnp.dot(x_ref[...], w1_ref[...], preferred_element_type=jnp.float32)
    h = jnp.maximum(h + b1_ref[...], 0.0)                 # bias/relu in f32
    acc_ref[...] += jnp.dot(h.astype(w2_ref.dtype), w2_ref[...],
                            preferred_element_type=jnp.float32)

    @pl.when(k == pl.num_programs(1) - 1)
    def _finalize():
        o_ref[...] = (acc_ref[...] + b2_ref[...]).astype(o_ref.dtype)


# --------------------------------------------------------------------------
# Wrapper
# --------------------------------------------------------------------------
@functools.partial(jax.jit,
                   static_argnames=("block_m", "ff_tile", "compute_dtype"))
def position_wise_ffn(x, w1, b1, w2, b2, *,
                      block_m=None, ff_tile=None, compute_dtype=None):
    """x: (..., d_model); w1: (d_model, d_ff); w2: (d_ff, d_model).

    block_m / ff_tile: None -> auto (sized against the chip's VMEM).
    compute_dtype: MXU operand dtype (e.g. jnp.bfloat16). Accumulation is
    always f32; output dtype matches x.dtype. For the cheapest call path,
    pre-cast W1/W2 to compute_dtype at init time.
    """
    orig_shape = x.shape
    d_model = x.shape[-1]
    d_ff = w1.shape[-1]
    out_dtype = x.dtype
    if compute_dtype is None:
        compute_dtype = x.dtype
    compute_dtype = jnp.dtype(compute_dtype)
    isz = compute_dtype.itemsize
    osz = jnp.dtype(out_dtype).itemsize

    x2d = x.reshape(-1, d_model)
    m = x2d.shape[0]

    d_model_p = _round_up(d_model, 128)
    d_ff_128 = _round_up(d_ff, 128)

    # ----- per-generation VMEM budget ------------------------------------
    cap = _vmem_capacity_bytes()
    usable = min(cap, 128 * 2**20)
    budget = min(int(usable * 0.80), 100 * 2**20)   # ~51 MiB on v7x, 100 MiB on v5e/v6e

    # ----- block_m: big as possible, but keep >=2 M-tiles for v7x megacore -
    bm = block_m if block_m is not None else 1024
    bm = min(_round_up(bm, 8), _round_up(m, 8))
    while bm > 256 and _round_up(m, bm) // bm < 2:
        bm = _round_up(bm // 2, 8)

    # ----- working-set estimators (double-buffered pipeline tiles) --------
    def resident_bytes(bm_):
        return (2 * bm_ * d_model_p * isz            # x tile
                + 2 * bm_ * d_model_p * osz          # out tile
                + 2 * d_model_p * d_ff_128 * isz     # W1 (full)
                + 2 * d_ff_128 * d_model_p * isz     # W2 (full)
                + 2 * (d_ff_128 + d_model_p) * 4     # f32 biases
                + bm_ * d_ff_128 * (4 + isz)         # hidden f32 + cast copy
                + bm_ * d_model_p * 4)               # second-matmul f32 temp

    def ktiled_bytes(bm_, ft_):
        return (2 * bm_ * d_model_p * isz            # x tile
                + 2 * bm_ * d_model_p * osz          # out tile
                + 2 * d_model_p * ft_ * isz          # W1 k-tile
                + 2 * ft_ * d_model_p * isz          # W2 k-tile
                + 2 * (ft_ + d_model_p) * 4          # f32 biases
                + bm_ * d_model_p * 4                # f32 accumulator scratch
                + bm_ * ft_ * (4 + isz)              # hidden chunk f32 + cast
                + bm_ * d_model_p * 4)               # second-matmul f32 temp

    def pick_ff(pref):
        n_k_ = _cdiv(d_ff_128, pref)
        ft_ = _round_up(_cdiv(d_ff_128, n_k_), 128)
        return ft_, ft_ * n_k_

    use_resident = (ff_tile is None) and (resident_bytes(bm) <= budget)

    if use_resident:
        d_ff_p = d_ff_128
        ft = d_ff_p
        n_k = 1
        tile_bytes = resident_bytes(bm)
    else:
        ff_pref = ff_tile if ff_tile is not None else 2048
        ff_pref = max(128, _round_up(min(ff_pref, d_ff_128), 128))
        ft, d_ff_p = pick_ff(ff_pref)
        while ktiled_bytes(bm, ft) > budget and ff_pref > 128:
            ff_pref = max(128, ff_pref // 2)
            ft, d_ff_p = pick_ff(ff_pref)
        while ktiled_bytes(bm, ft) > budget and bm > 8:
            bm = max(8, _round_up(bm // 2, 8))
        n_k = d_ff_p // ft
        tile_bytes = ktiled_bytes(bm, ft)

    m_p = _round_up(m, bm)
    n_m = m_p // bm

    # ----- operand prep (no-op when dtype/shape already match) ------------
    # Zero padding is exact for this FFN: relu(0) = 0, zero rows/cols add nothing.
    xp = _prep2d(x2d, m_p, d_model_p, compute_dtype)
    w1p = _prep2d(w1, d_model_p, d_ff_p, compute_dtype)
    w2p = _prep2d(w2, d_ff_p, d_model_p, compute_dtype)
    b1p = _prep2d(b1.reshape(1, -1), 1, d_ff_p, jnp.float32)     # biases stay f32
    b2p = _prep2d(b2.reshape(1, -1), 1, d_model_p, jnp.float32)

    # ----- vmem limit clamped to physical capacity -------------------------
    vmem_limit = int(min(int(usable * 0.90),
                         max(32 * 2**20, int(1.3 * tile_bytes))))

    # ----- cost estimate ---------------------------------------------------
    flops = 4 * m_p * d_model_p * d_ff_p
    w_bytes = (d_model_p * d_ff_p + d_ff_p * d_model_p) * isz
    if not use_resident:
        w_bytes *= n_m                      # weights re-streamed once per M-tile
    bytes_accessed = int(isz * m_p * d_model_p          # x
                         + w_bytes                      # W1 + W2
                         + 4 * (d_ff_p + d_model_p)     # biases
                         + osz * m_p * d_model_p)       # out

    # ----- specs / grid ----------------------------------------------------
    if use_resident:
        kernel = _ffn_kernel_resident
        grid = (n_m,)
        in_specs = [
            pl.BlockSpec((bm, d_model_p), lambda i: (i, 0)),     # x
            pl.BlockSpec((d_model_p, d_ff_p), lambda i: (0, 0)), # W1 (resident)
            pl.BlockSpec((1, d_ff_p), lambda i: (0, 0)),         # b1
            pl.BlockSpec((d_ff_p, d_model_p), lambda i: (0, 0)), # W2 (resident)
            pl.BlockSpec((1, d_model_p), lambda i: (0, 0)),      # b2
        ]
        out_specs = pl.BlockSpec((bm, d_model_p), lambda i: (i, 0))
        scratch_shapes = []
        dim_sem = ("parallel",)
    else:
        kernel = _ffn_kernel_ktiled
        grid = (n_m, n_k)
        in_specs = [
            pl.BlockSpec((bm, d_model_p), lambda i, k: (i, 0)),  # x
            pl.BlockSpec((d_model_p, ft), lambda i, k: (0, k)),  # W1 k-tile
            pl.BlockSpec((1, ft), lambda i, k: (0, k)),          # b1 k-tile
            pl.BlockSpec((ft, d_model_p), lambda i, k: (k, 0)),  # W2 k-tile
            pl.BlockSpec((1, d_model_p), lambda i, k: (0, 0)),   # b2
        ]
        out_specs = pl.BlockSpec((bm, d_model_p), lambda i, k: (i, 0))
        scratch_shapes = [pltpu.VMEM((bm, d_model_p), jnp.float32)]
        dim_sem = ("parallel", "arbitrary")
        # Note: if xprof shows exposed weight-tile DMA at large ff_tile, add
        # pipeline_mode=pl.Buffered(3) to the W1/W2 specs (VMEM headroom permitting).

    out = pl.pallas_call(
        kernel,
        out_shape=jax.ShapeDtypeStruct((m_p, d_model_p), out_dtype),
        grid_spec=pltpu.PrefetchScalarGridSpec(
            num_scalar_prefetch=0,
            grid=grid,
            in_specs=in_specs,
            out_specs=out_specs,
            scratch_shapes=scratch_shapes,
        ),
        compiler_params=pltpu.CompilerParams(
            dimension_semantics=dim_sem,
            vmem_limit_bytes=vmem_limit),
        cost_estimate=pl.CostEstimate(
            flops=flops, transcendentals=0, bytes_accessed=bytes_accessed),
    )(xp, w1p, b1p, w2p, b2p)

    return out[:m, :d_model].reshape(orig_shape)


def init_ffn_params(key, d_model, d_ff, dtype=jnp.float32):
    """Deterministic init mimicking PyTorch nn.Linear default (uniform ±1/sqrt(fan_in)).

    Weights are stored already transposed vs. PyTorch (i.e. weight.T) so the
    kernel does row-major x @ W. Pre-cast to the compute dtype here if running
    the bf16 path to avoid a per-call HBM cast copy.
    """
    k1, k2, k3, k4 = jax.random.split(key, 4)
    lim1 = 1.0 / jnp.sqrt(d_model)
    lim2 = 1.0 / jnp.sqrt(d_ff)
    w1 = jax.random.uniform(k1, (d_model, d_ff), dtype, minval=-lim1, maxval=lim1)
    b1 = jax.random.uniform(k2, (d_ff,), dtype, minval=-lim1, maxval=lim1)
    w2 = jax.random.uniform(k3, (d_ff, d_model), dtype, minval=-lim2, maxval=lim2)
    b2 = jax.random.uniform(k4, (d_model,), dtype, minval=-lim2, maxval=lim2)
    return w1, b1, w2, b2


if __name__ == "__main__":
    key = jax.random.PRNGKey(0)

    # ---- small shape consistent with the module (batch=2, seq=8, d_model=32, d_ff=64)
    batch, seq, d_model, d_ff = 2, 8, 32, 64
    kx, kp, kx2, kp2 = jax.random.split(key, 4)
    x = jax.random.normal(kx, (batch, seq, d_model), dtype=jnp.float32)
    w1, b1, w2, b2 = init_ffn_params(kp, d_model, d_ff)

    ref = jnp.maximum(x @ w1 + b1, 0.0) @ w2 + b2

    # Weights-resident fast path, f32.
    out = jax.block_until_ready(position_wise_ffn(x, w1, b1, w2, b2))
    assert out.shape == (batch, seq, d_model)
    assert jnp.allclose(out, ref, atol=1e-5, rtol=1e-5), "f32 resident mismatch"

    # Mixed precision: bf16 MXU operands, f32 accumulation / f32 biases.
    out_bf16 = jax.block_until_ready(
        position_wise_ffn(x, w1, b1, w2, b2, compute_dtype=jnp.bfloat16))
    assert jnp.allclose(out_bf16, ref, atol=5e-2, rtol=5e-2), "bf16 mismatch"

    # ---- also exercise the k-tiled reduction path (explicit ff_tile forces it)
    d_model2, d_ff2 = 64, 256
    x2 = jax.random.normal(kx2, (batch, seq, d_model2), dtype=jnp.float32)
    w1b, b1b, w2b, b2b = init_ffn_params(kp2, d_model2, d_ff2)
    ref2 = jnp.maximum(x2 @ w1b + b1b, 0.0) @ w2b + b2b
    out2 = jax.block_until_ready(
        position_wise_ffn(x2, w1b, b1b, w2b, b2b, ff_tile=128))
    assert jnp.allclose(out2, ref2, atol=1e-5, rtol=1e-5), "f32 k-tiled mismatch"

    print("KERNEL_OK")
</pallas_src>

<mosaic_0001>
module attributes {stable_mosaic.version = 11 : i64} {
  func.func @_ffn_kernel_resident(%arg0: i32, %arg1: memref<16x128xf32, #tpu.memory_space<vmem>>, %arg2: memref<128x128xf32, #tpu.memory_space<vmem>>, %arg3: memref<1x128xf32, #tpu.memory_space<vmem>>, %arg4: memref<128x128xf32, #tpu.memory_space<vmem>>, %arg5: memref<1x128xf32, #tpu.memory_space<vmem>>, %arg6: memref<16x128xf32, #tpu.memory_space<vmem>>) attributes {dimension_semantics = [#tpu.dimension_semantics<parallel>], iteration_bounds = array<i64: 1>, scalar_prefetch = 0 : i64, scratch_operands = 0 : i64, tpu.core_type = #tpu.core_type<tc>, window_params = [{transform_indices = @transform_0, window_bounds = array<i64: 16, 128>}, {pipeline_mode = #tpu.pipeline_mode<synchronous>, transform_indices = @transform_1, window_bounds = array<i64: 128, 128>}, {pipeline_mode = #tpu.pipeline_mode<synchronous>, transform_indices = @transform_2, window_bounds = array<i64: 1, 128>}, {pipeline_mode = #tpu.pipeline_mode<synchronous>, transform_indices = @transform_3, window_bounds = array<i64: 128, 128>}, {pipeline_mode = #tpu.pipeline_mode<synchronous>, transform_indices = @transform_4, window_bounds = array<i64: 1, 128>}, {transform_indices = @transform_5, window_bounds = array<i64: 16, 128>}]} {
    %c0 = arith.constant 0 : index
    %c0_0 = arith.constant 0 : index
    %0 = vector.load %arg1[%c0, %c0_0] : memref<16x128xf32, #tpu.memory_space<vmem>>, vector<16x128xf32>
    %c0_1 = arith.constant 0 : index
    %c0_2 = arith.constant 0 : index
    %1 = vector.load %arg2[%c0_1, %c0_2] : memref<128x128xf32, #tpu.memory_space<vmem>>, vector<128x128xf32>
    %cst = arith.constant dense<0.000000e+00> : vector<16x128xf32>
    %2 = tpu.matmul %0, %1, %cst {dimension_numbers = #tpu.dot_dimension_numbers<[1], [0], [0], [1], [0, 0, 1, 1], [], []>} : vector<16x128xf32>, vector<128x128xf32>, vector<16x128xf32> -> vector<16x128xf32>
    %c0_3 = arith.constant 0 : index
    %c0_4 = arith.constant 0 : index
    %3 = vector.load %arg3[%c0_3, %c0_4] : memref<1x128xf32, #tpu.memory_space<vmem>>, vector<1x128xf32>
    %4 = vector.broadcast %3 : vector<1x128xf32> to vector<16x128xf32>
    %5 = arith.addf %2, %4 : vector<16x128xf32>
    %cst_5 = arith.constant 0.000000e+00 : f32
    %6 = vector.broadcast %cst_5 : f32 to vector<16x128xf32>
    %7 = arith.maximumf %5, %6 : vector<16x128xf32>
    %c0_6 = arith.constant 0 : index
    %c0_7 = arith.constant 0 : index
    %8 = vector.load %arg4[%c0_6, %c0_7] : memref<128x128xf32, #tpu.memory_space<vmem>>, vector<128x128xf32>
    %cst_8 = arith.constant dense<0.000000e+00> : vector<16x128xf32>
    %9 = tpu.matmul %7, %8, %cst_8 {dimension_numbers = #tpu.dot_dimension_numbers<[1], [0], [0], [1], [0, 0, 1, 1], [], []>} : vector<16x128xf32>, vector<128x128xf32>, vector<16x128xf32> -> vector<16x128xf32>
    %c0_9 = arith.constant 0 : index
    %c0_10 = arith.constant 0 : index
    %10 = vector.load %arg5[%c0_9, %c0_10] : memref<1x128xf32, #tpu.memory_space<vmem>>, vector<1x128xf32>
    %11 = vector.broadcast %10 : vector<1x128xf32> to vector<16x128xf32>
    %12 = arith.addf %9, %11 : vector<16x128xf32>
    %c0_11 = arith.constant 0 : index
    %c0_12 = arith.constant 0 : index
    %13 = vector.load %arg6[%c0_11, %c0_12] : memref<16x128xf32, #tpu.memory_space<vmem>>, vector<16x128xf32>
    tpu.vector_store %arg6[%c0_11, %c0_12], %12 {strides = array<i32>} : memref<16x128xf32, #tpu.memory_space<vmem>>, vector<16x128xf32>,
    return
  }
  func.func @transform_0(%arg0: i32) -> (i32, i32) {
    %c0_i32 = arith.constant 0 : i32
    %c0_i32_0 = arith.constant 0 : i32
    return %arg0, %c0_i32 : i32, i32
  }
  func.func @transform_1(%arg0: i32) -> (i32, i32) {
    %c0_i32 = arith.constant 0 : i32
    %c0_i32_0 = arith.constant 0 : i32
    %c0_i32_1 = arith.constant 0 : i32
    return %c0_i32, %c0_i32_0 : i32, i32
  }
  func.func @transform_2(%arg0: i32) -> (i32, i32) {
    %c0_i32 = arith.constant 0 : i32
    %c0_i32_0 = arith.constant 0 : i32
    %c0_i32_1 = arith.constant 0 : i32
    return %c0_i32, %c0_i32_0 : i32, i32
  }
  func.func @transform_3(%arg0: i32) -> (i32, i32) {
    %c0_i32 = arith.constant 0 : i32
    %c0_i32_0 = arith.constant 0 : i32
    %c0_i32_1 = arith.constant 0 : i32
    return %c0_i32, %c0_i32_0 : i32, i32
  }
  func.func @transform_4(%arg0: i32) -> (i32, i32) {
    %c0_i32 = arith.constant 0 : i32
    %c0_i32_0 = arith.constant 0 : i32
    %c0_i32_1 = arith.constant 0 : i32
    return %c0_i32, %c0_i32_0 : i32, i32
  }
  func.func @transform_5(%arg0: i32) -> (i32, i32) {
    %c0_i32 = arith.constant 0 : i32
    %c0_i32_0 = arith.constant 0 : i32
    return %arg0, %c0_i32 : i32, i32
  }
}

</mosaic_0001>

<bundles_post_ra>
// kernel: position_wise_ffn.1
= control target key start
LH: loop header
LB: loop body
LE: loop exit
PB: predicated region body
PF: predicated region fallthrough
CT: control target
= control target key end

     0   :  { %s294_s1 = inlined_call_operand.vmem [shape: f32[128,128], index: 1, kind: input, shape index: {}]   ;;  %s295_s3 = inlined_call_operand.vmem [shape: f32[128,128], index: 3, kind: input, shape index: {}]   ;;  %s296_s2 = inlined_call_operand.vmem [shape: f32[1,128], index: 2, kind: input, shape index: {}]   ;;  %s297_s0 = inlined_call_operand.vmem [shape: f32[16,128], index: 0, kind: input, shape index: {}]   ;;  %s298_s4 = inlined_call_operand.vmem [shape: f32[1,128], index: 4, kind: input, shape index: {}]   ;;  %s299_s5 = inlined_call_operand.vmem [shape: f32[16,128], index: 5, kind: output, shape index: {}]  }
   0x1   :  { %v37_v0 = vld [vmem:[%s294_s1 + $0x78] sm:$0xff]  ;;  %v36_v1 = vld [vmem:[%s294_s1 + $0x70] sm:$0xff]  ;;  %v35_v2 = vld [vmem:[%s294_s1 + $0x68] sm:$0xff] }
   0x2   :  { %116 = vmatpush.msra.mxu2 %v37_v0  ;;  %42 = vmatpush.msra.mxu0 %v37_v0  ;;  %v34_v3 = vld [vmem:[%s294_s1 + $0x60] sm:$0xff]  ;;  %v33_v4 = vld [vmem:[%s294_s1 + $0x58] sm:$0xff]  ;;  %v81_v6 = vld [vmem:[%s295_s3 + $0x70] sm:$0xff] }
   0x3   :  { %v82_v5 = vld [vmem:[%s295_s3 + $0x78] sm:$0xff]  ;;  %v32_v7 = vld [vmem:[%s294_s1 + $0x50] sm:$0xff]  ;;  %v80_v8 = vld [vmem:[%s295_s3 + $0x68] sm:$0xff] }
   0x4   :  { %117 = vmatpush.msra.mxu2 %v36_v1  ;;  %43 = vmatpush.msra.mxu0 %v36_v1  ;;  %v31_v9 = vld [vmem:[%s294_s1 + $0x48] sm:$0xff]  ;;  %v79_v10 = vld [vmem:[%s295_s3 + $0x60] sm:$0xff]  ;;  %v78_v12 = vld [vmem:[%s295_s3 + $0x58] sm:$0xff] }
   0x5   :  { %132 = vmatpush.msra.mxu3 %v82_v5  ;;  %87 = vmatpush.msra.mxu1 %v82_v5  ;;  %v30_v11 = vld [vmem:[%s294_s1 + $0x40] sm:$0xff]  ;;  %v29_v13 = vld [vmem:[%s294_s1 + $0x38] sm:$0xff]  ;;  %v77_v14 = vld [vmem:[%s295_s3 + $0x50] sm:$0xff] }
   0x6   :  { %118 = vmatpush.msra.mxu2 %v35_v2  ;;  %44 = vmatpush.msra.mxu0 %v35_v2  ;;  %v28_v15 = vld [vmem:[%s294_s1 + $0x30] sm:$0xff]  ;;  %v76_v16 = vld [vmem:[%s295_s3 + $0x48] sm:$0xff]  ;;  %v75_v18 = vld [vmem:[%s295_s3 + $0x40] sm:$0xff] }
   0x7   :  { %133 = vmatpush.msra.mxu3 %v81_v6  ;;  %88 = vmatpush.msra.mxu1 %v81_v6  ;;  %v27_v17 = vld [vmem:[%s294_s1 + $0x28] sm:$0xff]  ;;  %v26_v19 = vld [vmem:[%s294_s1 + $0x20] sm:$0xff]  ;;  %v74_v20 = vld [vmem:[%s295_s3 + $0x38] sm:$0xff] }
   0x8   :  { %119 = vmatpush.msra.mxu2 %v34_v3  ;;  %45 = vmatpush.msra.mxu0 %v34_v3  ;;  %v25_v21 = vld [vmem:[%s294_s1 + $0x18] sm:$0xff]  ;;  %v73_v22 = vld [vmem:[%s295_s3 + $0x30] sm:$0xff]  ;;  %v72_v24 = vld [vmem:[%s295_s3 + $0x28] sm:$0xff] }
   0x9   :  { %134 = vmatpush.msra.mxu3 %v80_v8  ;;  %89 = vmatpush.msra.mxu1 %v80_v8  ;;  %v24_v23 = vld [vmem:[%s294_s1 + $0x10] sm:$0xff]  ;;  %v23_v25 = vld [vmem:[%s294_s1 + $0x8] sm:$0xff]  ;;  %v71_v26 = vld [vmem:[%s295_s3 + $0x20] sm:$0xff] }
   0xa   :  { %120 = vmatpush.msra.mxu2 %v33_v4  ;;  %46 = vmatpush.msra.mxu0 %v33_v4  ;;  %v22_v27 = vld [vmem:[%s294_s1] sm:$0xff]  ;;  %v21_v28 = vld [vmem:[%s297_s0 + $0x8] sm:$0xff]  ;;  %v70_v30 = vld [vmem:[%s295_s3 + $0x18] sm:$0xff] }
   0xb   :  { %135 = vmatpush.msra.mxu3 %v79_v10  ;;  %90 = vmatpush.msra.mxu1 %v79_v10  ;;  %v20_v29 = vld [vmem:[%s297_s0] sm:$0xff]  ;;  %v69_v31 = vld [vmem:[%s295_s3 + $0x10] sm:$0xff]  ;;  %v68_v32 = vld [vmem:[%s295_s3 + $0x8] sm:$0xff] }
   0xc   :  { %121 = vmatpush.msra.mxu2 %v32_v7  ;;  %47 = vmatpush.msra.mxu0 %v32_v7  ;;  %v67_v33 = vld [vmem:[%s295_s3] sm:$0xff] }
   0xd   :  { %136 = vmatpush.msra.mxu3 %v78_v12  ;;  %91 = vmatpush.msra.mxu1 %v78_v12  ;;  %v148_v34 = vld [vmem:[%s296_s2] ss:$0 sm:$0xff] }
   0xe   :  { %122 = vmatpush.msra.mxu2 %v31_v9  ;;  %48 = vmatpush.msra.mxu0 %v31_v9  ;;  %v149_v41 = vld [vmem:[%s298_s4] ss:$0 sm:$0xff] }
   0xf   :  { %137 = vmatpush.msra.mxu3 %v77_v14  ;;  %92 = vmatpush.msra.mxu1 %v77_v14 }
  0x10   :  { %123 = vmatpush.msra.mxu2 %v30_v11  ;;  %49 = vmatpush.msra.mxu0 %v30_v11 }
  0x11   :  { %138 = vmatpush.msra.mxu3 %v76_v16  ;;  %93 = vmatpush.msra.mxu1 %v76_v16 }
  0x12   :  { %124 = vmatpush.msra.mxu2 %v29_v13  ;;  %50 = vmatpush.msra.mxu0 %v29_v13 }
  0x13   :  { %139 = vmatpush.msra.mxu3 %v75_v18  ;;  %94 = vmatpush.msra.mxu1 %v75_v18 }
  0x14   :  { %125 = vmatpush.msra.mxu2 %v28_v15  ;;  %51 = vmatpush.msra.mxu0 %v28_v15 }
  0x15   :  { %140 = vmatpush.msra.mxu3 %v74_v20  ;;  %95 = vmatpush.msra.mxu1 %v74_v20 }
  0x16   :  { %126 = vmatpush.msra.mxu2 %v27_v17  ;;  %52 = vmatpush.msra.mxu0 %v27_v17 }
  0x17   :  { %141 = vmatpush.msra.mxu3 %v73_v22  ;;  %96 = vmatpush.msra.mxu1 %v73_v22 }
  0x18   :  { %127 = vmatpush.msra.mxu2 %v26_v19  ;;  %53 = vmatpush.msra.mxu0 %v26_v19 }
  0x19   :  { %142 = vmatpush.msra.mxu3 %v72_v24  ;;  %97 = vmatpush.msra.mxu1 %v72_v24 }
  0x1a   :  { %128 = vmatpush.msra.mxu2 %v25_v21  ;;  %54 = vmatpush.msra.mxu0 %v25_v21 }
  0x1b   :  { %143 = vmatpush.msra.mxu3 %v71_v26  ;;  %98 = vmatpush.msra.mxu1 %v71_v26 }
  0x1c   :  { %129 = vmatpush.msra.mxu2 %v24_v23  ;;  %55 = vmatpush.msra.mxu0 %v24_v23 }
  0x1d   :  { %144 = vmatpush.msra.mxu3 %v70_v30  ;;  %99 = vmatpush.msra.mxu1 %v70_v30 }
  0x1e   :  { %130 = vmatpush.msra.mxu2 %v23_v25  ;;  %56 = vmatpush.msra.mxu0 %v23_v25 }
  0x1f   :  { %145 = vmatpush.msra.mxu3 %v69_v31  ;;  %100 = vmatpush.msra.mxu1 %v69_v31 }
  0x20   :  { %131 = vmatpush.msra.mxu2 %v22_v27  ;;  %57 = vmatpush.msra.mxu0 %v22_v27 }
  0x21   :  { %61 = vmatmul.f32.vlgmr.msra.gmra.mxu2 %v21_v28  ;;  %58 = vmatmul.f32.vlgmr.msra.gmra.mxu0 %v20_v29 }
  0x22   :  { %146 = vmatpush.msra.mxu3 %v68_v32  ;;  %101 = vmatpush.msra.mxu1 %v68_v32 }
  0x24   :  { %147 = vmatpush.msra.mxu3 %v67_v33  ;;  %102 = vmatpush.msra.mxu1 %v67_v33 }
  0x9e   :  { %v59_v35 = vpop.f32.mrf.mxu0 }
  0x9f   :  { %v60_v36 = vadd.f32 %v148_v34, %v59_v35 }
  0xa1   :  { %v65_v37 = vmax.f32 %v60_v36, 0.0 }
  0xa3   :  { %103 = vmatmul.f32.vlgmr.msra.gmra.mxu1 %v65_v37 }
  0xa4   :  { %v62_v38 = vpop.f32.mrf.mxu2 }
  0xa5   :  { %v63_v39 = vadd.f32 %v148_v34, %v62_v38 }
  0xa7   :  { %v66_v40 = vmax.f32 %v63_v39, 0.0 }
  0xa9   :  { %106 = vmatmul.f32.vlgmr.msra.gmra.mxu3 %v66_v40 }
 0x120   :  { %v104_v42 = vpop.f32.mrf.mxu1 }
 0x121   :  { %v105_v43 = vadd.f32 %v149_v41, %v104_v42 }
 0x123   :  { %110 = vst [vmem:[%s299_s5] sm:$0xff] %v105_v43 }
 0x12c   :  { %v107_v44 = vpop.f32.mrf.mxu3 }
 0x12d   :  { %v108_v45 = vadd.f32 %v149_v41, %v107_v44 }
 0x12f   :  { %111 = vst [vmem:[%s299_s5 + $0x8] sm:$0xff] %v108_v45 }

</bundles_post_ra>
